<compile_context>
chip_gen: v6e
topology: v6e:2x2x1
jax: 0.10.0
libtpu: 0.0.40
codegen_flags: <defaults>
</compile_context>

<pallas_src>
import jax
import jax.numpy as jnp
from jax.experimental import pallas as pl
from jax.experimental.pallas import tpu as pltpu


def _adaln_kernel(x_ref, w_ref, b_ref, o_ref):
    # SiLU recomputed each step: it is only (tile_m x D) elementwise + one EUP
    # sigmoid, invisible next to the streamed W tile, and it is megacore-safe.
    j = pl.program_id(0)                                  # output-feature tile index
    xf = x_ref[...].astype(jnp.float32)
    h = (xf * jax.nn.sigmoid(xf)).astype(w_ref.dtype)     # native-dtype operand to MXU
    acc = jnp.dot(h, w_ref[...], preferred_element_type=jnp.float32)
    b = b_ref[pl.ds(j, 1), :].astype(jnp.float32)         # grid-resident bias, row j
    o_ref[...] = (acc + b).astype(o_ref.dtype)


def _round_up(x, m):
    return ((x + m - 1) // m) * m


def adaln_zero_modulation(x, weight_t, bias):
    """AdaLN-Zero modulation: Linear(SiLU(x)).

    x:        (B, dim)
    weight_t: (dim, dim*n*k)   -- transposed torch weight (W^T)
    bias:     (dim*n*k,)
    """
    B, D = x.shape
    Dout = weight_t.shape[1]
    assert weight_t.shape[0] == D and bias.shape == (Dout,)

    x_bytes = jnp.dtype(x.dtype).itemsize
    w_bytes = jnp.dtype(weight_t.dtype).itemsize
    o_bytes = x_bytes

    # ---- per-generation VMEM sizing --------------------------------------
    try:
        vmem_cap = int(pltpu.get_tpu_info().vmem_capacity_bytes)
    except Exception:
        vmem_cap = 64 * 1024 * 1024            # conservative (v7x-sized) default
    dual_tc = vmem_cap <= 64 * 1024 * 1024     # v7x: 2 TCs, 64 MiB VMEM per TC
    budget = (vmem_cap * 9) // 16              # ~36 MiB on v7x, ~72 MiB on v5e/v6e

    # ---- batch (M) tiling --------------------------------------------------
    row_mult = 8 if x_bytes >= 4 else 16       # sublane multiple -> unmasked stores
    Bp = max(row_mult, _round_up(B, row_mult))
    if Bp > 256:
        tile_m = 256                           # matches v6e/v7x 256-wide MXU
        Bp = _round_up(Bp, tile_m)
    else:
        tile_m = Bp
    grid_m = Bp // tile_m
    xp = x if Bp == B else jnp.pad(x, ((0, Bp - B), (0, 0)))

    # ---- output-feature (N) tiling: divisor-based, VMEM-budgeted ----------
    def vmem_need(t):
        return (2 * D * t * w_bytes                 # W^T tile, double-buffered
                + 2 * tile_m * t * o_bytes          # output tile, double-buffered
                + 2 * tile_m * D * x_bytes          # x tile, double-buffered/resident
                + tile_m * D * (4 + w_bytes)        # SiLU f32 temp + cast to W dtype
                + tile_m * t * 4                    # f32 matmul accumulator temp
                + 8 * _round_up(Dout, 128) * 4      # grid-resident bias (padded)
                + (2 << 20))                        # slack

    divs = [t for t in range(128, Dout + 1, 128) if Dout % t == 0]
    if not divs:
        tile_n = Dout                               # odd Dout: single full-width block
    else:
        fitting = [t for t in divs if vmem_need(t) <= budget]
        if not fitting:
            tile_n = divs[0]                        # smallest tile; best effort
        else:
            pool = fitting
            if dual_tc and grid_m == 1:
                # keep >= 2 (prefer even) grid steps so both v7x TCs stream weights
                even = [t for t in fitting
                        if (Dout // t) >= 2 and (Dout // t) % 2 == 0]
                multi = [t for t in fitting if (Dout // t) >= 2]
                pool = even or multi or fitting
            tile_n = max(pool)                      # largest 128-multiple divisor
    grid_n = Dout // tile_n

    bias2 = bias.astype(jnp.float32).reshape(grid_n, tile_n)

    vmem_limit = max((vmem_cap * 3) // 4, vmem_need(tile_n) + (4 << 20))
    vmem_limit = min(vmem_limit, (vmem_cap * 9) // 10)

    cost = pl.CostEstimate(
        flops=2 * Bp * D * Dout,
        transcendentals=Bp * D * grid_n,
        bytes_accessed=(D * Dout * w_bytes
                        + Bp * D * x_bytes * grid_n
                        + Dout * 4
                        + Bp * Dout * o_bytes),
    )

    out = pl.pallas_call(
        _adaln_kernel,
        out_shape=jax.ShapeDtypeStruct((Bp, Dout), x.dtype),
        grid_spec=pltpu.PrefetchScalarGridSpec(
            num_scalar_prefetch=0,
            grid=(grid_n, grid_m),                              # N outer, M inner
            in_specs=[
                pl.BlockSpec((tile_m, D), lambda j, i: (i, 0)),       # x tile
                pl.BlockSpec((D, tile_n), lambda j, i: (0, j)),       # W^T tile
                pl.BlockSpec((grid_n, tile_n), lambda j, i: (0, 0)),  # bias, resident
            ],
            out_specs=pl.BlockSpec((tile_m, tile_n), lambda j, i: (i, j)),
        ),
        compiler_params=pltpu.CompilerParams(
            dimension_semantics=("parallel", "parallel"),
            vmem_limit_bytes=int(vmem_limit)),
        cost_estimate=cost,
    )(xp, weight_t, bias2)

    return out[:B] if Bp != B else out


if __name__ == "__main__":
    # Small shapes consistent with the module: dim=32, n=4, k=3 -> out = 384.
    B, dim, n, k = 2, 32, 4, 3
    Dout = dim * n * k

    key = jax.random.PRNGKey(0)
    kx, kw, kb = jax.random.split(key, 3)
    x = jax.random.normal(kx, (B, dim), dtype=jnp.float32)

    # AdaLN-Zero init is all-zeros; use small random params so the matmul path
    # is actually exercised.  Weights stream in bf16 (kernel is weight-bandwidth
    # bound); accumulation stays f32.
    weight_t = (jax.random.normal(kw, (dim, Dout), dtype=jnp.float32)
                * 0.02).astype(jnp.bfloat16)
    bias = jax.random.normal(kb, (Dout,), dtype=jnp.float32) * 0.02

    out = jax.block_until_ready(adaln_zero_modulation(x, weight_t, bias))

    # Pure-JAX reference at matching precision (bf16 operands, f32 accumulate).
    h = x * jax.nn.sigmoid(x)
    ref = (jnp.dot(h.astype(jnp.bfloat16), weight_t,
                   preferred_element_type=jnp.float32) + bias).astype(x.dtype)
    assert out.shape == (B, Dout)
    assert jnp.allclose(out, ref, atol=2e-2, rtol=2e-2)

    # Faithful AdaLN-Zero (zero-init) path -> exactly zero output.
    out_zero = jax.block_until_ready(adaln_zero_modulation(
        x, jnp.zeros((dim, Dout), jnp.bfloat16), jnp.zeros((Dout,), jnp.float32)))
    assert jnp.allclose(out_zero, 0.0)

    print("KERNEL_OK")
</pallas_src>

<mosaic_0001>
module attributes {stable_mosaic.version = 11 : i64} {
  func.func @_adaln_kernel(%arg0: i32, %arg1: i32, %arg2: memref<8x32xf32, #tpu.memory_space<vmem>>, %arg3: memref<32x128xbf16, #tpu.memory_space<vmem>>, %arg4: memref<3x128xf32, #tpu.memory_space<vmem>>, %arg5: memref<8x128xf32, #tpu.memory_space<vmem>>) attributes {dimension_semantics = [#tpu.dimension_semantics<parallel>, #tpu.dimension_semantics<parallel>], iteration_bounds = array<i64: 3, 1>, scalar_prefetch = 0 : i64, scratch_operands = 0 : i64, tpu.core_type = #tpu.core_type<tc>, window_params = [{transform_indices = @transform_0, window_bounds = array<i64: 8, 32>}, {transform_indices = @transform_1, window_bounds = array<i64: 32, 128>}, {pipeline_mode = #tpu.pipeline_mode<synchronous>, transform_indices = @transform_2, window_bounds = array<i64: 3, 128>}, {transform_indices = @transform_3, window_bounds = array<i64: 8, 128>}]} {
    %c0 = arith.constant 0 : index
    %c0_0 = arith.constant 0 : index
    %0 = vector.load %arg2[%c0, %c0_0] : memref<8x32xf32, #tpu.memory_space<vmem>>, vector<8x32xf32>
    %1 = arith.negf %0 : vector<8x32xf32>
    %2 = math.exp %1 : vector<8x32xf32>
    %cst = arith.constant 1.000000e+00 : f32
    %3 = vector.broadcast %cst : f32 to vector<8x32xf32>
    %4 = arith.addf %3, %2 : vector<8x32xf32>
    %5 = arith.divf %3, %4 : vector<8x32xf32>
    %6 = arith.mulf %0, %5 : vector<8x32xf32>
    %7 = arith.truncf %6 : vector<8x32xf32> to vector<8x32xbf16>
    %c0_1 = arith.constant 0 : index
    %c0_2 = arith.constant 0 : index
    %8 = vector.load %arg3[%c0_1, %c0_2] : memref<32x128xbf16, #tpu.memory_space<vmem>>, vector<32x128xbf16>
    %cst_3 = arith.constant dense<0.000000e+00> : vector<8x128xf32>
    %9 = tpu.matmul %7, %8, %cst_3 {dimension_numbers = #tpu.dot_dimension_numbers<[1], [0], [0], [1], [0, 0, 1, 1], [], []>} : vector<8x32xbf16>, vector<32x128xbf16>, vector<8x128xf32> -> vector<8x128xf32>
    %10 = arith.index_cast %arg0 : i32 to index
    %c0_4 = arith.constant 0 : index
    %11 = vector.load %arg4[%10, %c0_4] : memref<3x128xf32, #tpu.memory_space<vmem>>, vector<1x128xf32>
    %12 = vector.broadcast %11 : vector<1x128xf32> to vector<8x128xf32>
    %13 = arith.addf %9, %12 : vector<8x128xf32>
    %c0_5 = arith.constant 0 : index
    %c0_6 = arith.constant 0 : index
    %14 = vector.load %arg5[%c0_5, %c0_6] : memref<8x128xf32, #tpu.memory_space<vmem>>, vector<8x128xf32>
    tpu.vector_store %arg5[%c0_5, %c0_6], %13 {strides = array<i32>} : memref<8x128xf32, #tpu.memory_space<vmem>>, vector<8x128xf32>,
    return
  }
  func.func @transform_0(%arg0: i32, %arg1: i32) -> (i32, i32) {
    %c0_i32 = arith.constant 0 : i32
    %c0_i32_0 = arith.constant 0 : i32
    return %arg1, %c0_i32 : i32, i32
  }
  func.func @transform_1(%arg0: i32, %arg1: i32) -> (i32, i32) {
    %c0_i32 = arith.constant 0 : i32
    %c0_i32_0 = arith.constant 0 : i32
    return %c0_i32, %arg0 : i32, i32
  }
  func.func @transform_2(%arg0: i32, %arg1: i32) -> (i32, i32) {
    %c0_i32 = arith.constant 0 : i32
    %c0_i32_0 = arith.constant 0 : i32
    %c0_i32_1 = arith.constant 0 : i32
    return %c0_i32, %c0_i32_0 : i32, i32
  }
  func.func @transform_3(%arg0: i32, %arg1: i32) -> (i32, i32) {
    %c0_i32 = arith.constant 0 : i32
    return %arg1, %arg0 : i32, i32
  }
}

</mosaic_0001>

<bundles_post_ra>
// kernel: tpu_custom_call.1
= control target key start
LH: loop header
LB: loop body
LE: loop exit
PB: predicated region body
PF: predicated region fallthrough
CT: control target
= control target key end

     0   :  { %8 = vsyncpa [#allocation3], 0  ;;  %s951_s0 = inlined_call_operand.hbm [shape: f32[8,32], index: 0, kind: input, shape index: {}]   ;;  %s952_s1 = inlined_call_operand.hbm [shape: bf16[32,384], index: 1, kind: input, shape index: {}]   ;;  %s953_s2 = inlined_call_operand.hbm [shape: f32[3,128], index: 2, kind: input, shape index: {}]   ;;  %s954_s3 = inlined_call_operand.hbm [shape: f32[8,384], index: 3, kind: output, shape index: {}]  }
   0x1   :  { %9 = vsyncpa [#allocation6], 0 }
   0x2   :  { %11 = vsyncpa [#allocation6 + $0x1], 0 }
   0x3   :  { %12 = vsyncpa [#allocation4], 0 }
   0x4   :  { %14 = vsyncpa [#allocation4 + $0x1], 0  ;;  %s757_s12 = smov 0   ;;  %s759_s13 = smov 0  }
   0x5   :  { %s761_s14 = smov 0   ;;  %s763_s15 = smov 0  }
   0x6   :  { %s765_s16 = smov 0   ;;  %s767_s17 = smov 0  }
   0x7 LB: > { %s788_s18 = sadd.s32 4294967295, %s726_s17   ;;  %s432_s19 = sadd.s32 4294967294, %s726_s17   ;;  %s726_s17 = sphi %s767_s17, %s20_s17   ;;  %s722_s16 = sphi %s765_s16, %s980_s16   ;;  %s718_s15 = sphi %s763_s15, %s979_s15   ;;  %s714_s14 = sphi %s761_s14, %s978_s14   ;;  %s710_s13 = sphi %s759_s13, %s977_s13   ;;  %s706_s12 = sphi %s757_s12, %s976_s12  }
   0x8   : > { %s65_s20 = sadd.s32 1, %s714_s14  ;;  %p72_p0 = scmp.ne.s32.totalorder %s714_s14, %s710_s13 }
   0x9   : > { %p73_p1 = scmp.eq.s32.totalorder %s726_s17, 0  ;;  %p78_p2 = scmp.ne.s32.totalorder %s710_s13, %s706_s12 }
   0xa   : > { %p955_p3 = scmp.eq.s32.totalorder %s788_s18, 0  ;;  %p125_p4 = scmp.eq.s32.totalorder %s788_s18, 2 }
   0xb   : > { %p799_p5 = por %p73_p1, %p72_p0  ;;  %p131_p6 = scmp.eq.s32.totalorder %s432_s19, 2 }
   0xc   : > { %p805_p7 = por %p955_p3, %p78_p2  ;;  %p809_p8 = por %p125_p4, %p72_p0 }
   0xd   : > { %p813_p9 = por %p131_p6, %p78_p2  ;;  %p433_p10 = scmp.ge.s32.totalorder %s726_s17, 1 }
   0xe   : > { %s961_s22 = scalar_select %p805_p7, 1, 0 }
   0xf   : > { %s962_s23 = scalar_select %p809_p8, 1, 0 }
  0x10   : > { %s963_s24 = scalar_select %p813_p9, 1, 0 }
  0x11   : > { %p138_p11 = scmp.lt.s32.totalorder %s726_s17, 4  ;;  %s728_s26 = smov [#allocation7]  }
  0x12   : > { %s164_s27 = sshll.u32 %s728_s26, 4  ;;  %p493_p13 = scmp.lt.s32.totalorder %s726_s17, 3  ;;  %s165_s27 = int_to_ptr.vmem [resolvable:$true] %s164_s27 }
  0x13   : > { %p819_p12 = pnand %p433_p10, %p138_p11  ;;  %s729_s30 = smov [#allocation2]  }
  0x14   : > { %p828_p1 = pnand %p493_p13, %p799_p5  ;;  %s153_s4 = sshll.u32 %s729_s30, 4  ;;  %s154_s4 = int_to_ptr.vmem [resolvable:$true] %s153_s4 }
  0x15   : > { %s964_s25 = scalar_select %p819_p12, 1, 0 }
  0x16   : > { %p476_p0 = pneg %p819_p12  ;;  %s569_s5 = scalar_lea.vmem %s165_s27, 64 }
  0x17   : > { %s965_s28 = scalar_select %p828_p1, 1, 0 }
  0x18   : > { %p834_p2 = pnand %p476_p0, %p955_p3  ;;  %p570_p6 = scmp.ne.s32.totalorder %s165_s27, %s569_s5 }
  0x19   : > { %p577_p11 = scmp.lt.s32.totalorder %s165_s27, %s165_s27  ;;  %p578_p13 = scmp.lt.s32.totalorder %s569_s5, %s569_s5 }
  0x1a   : > { %p560_p4 = pneg %p834_p2 }
  0x1b   : > { %p579_p9 = por %p578_p13, %p577_p11 }
  0x1c   : > { %p572_p5 = pnand %p570_p6, %p560_p4 }
  0x1e   : > { %p573_p10 = pneg %p572_p5 }
  0x20   : > { %p580_p0 = pnand %p579_p9, %p573_p10 }
  0x22   : > { %583 = shalt.err (!%p580_p0)
}
  0x23   : > { %482 = dma.hbm_to_vmem [thread:$0]  (!%p834_p2), %s953_s2, 64, %s165_s27, [#allocation6]  }
  0x24   : > { %s595_s8 = scalar_lea.vmem %s154_s4, 128  ;;  %p603_p6 = scmp.lt.s32.totalorder %s154_s4, %s154_s4 }
  0x25   : > { %p596_p3 = scmp.ne.s32.totalorder %s154_s4, %s595_s8  ;;  %p604_p5 = scmp.lt.s32.totalorder %s595_s8, %s595_s8 }
  0x27   : > { %p598_p8 = pnand %p596_p3, %p560_p4  ;;  %p605_p12 = por %p604_p5, %p603_p6 }
  0x29   : > { %p599_p7 = pneg %p598_p8 }
  0x2b   : > { %p606_p1 = pnand %p605_p12, %p599_p7 }
  0x2d   : > { %609 = shalt.err (!%p606_p1)
}
  0x2e   : > { %479 = dma.hbm_to_vmem [thread:$0]  (!%p834_p2), %s951_s0, 128, %s154_s4, [#allocation3]  }
  0x2f   : > { %s175_s11 = sand.u32 1, %s726_s17   ;;  %s32_s19 = sadd.s32 1, %s722_s16 }
  0x30   : > { %s177_s21 = sand.u32 1, %s714_s14   ;;  %p34_p3 = scmp.ge.s32.totalorder %s32_s19, 3 }
  0x31   : > { %s437_s26 = sshll.u32 %s177_s21, 4  ;;  %s438_s27 = sshll.u32 %s722_s16, 6 }
  0x32   : > { %s982_s19 = smov (%p34_p3, %s32_s19), 0  ;;  %s865_s5 = scalar_lea.hbm %s952_s1, %s438_s27 }
  0x33   : > { %s179_s6 = scalar_lea.vmem [#allocation5], %s437_s26  ;;  %s62_s8 = ssub.s32 %s722_s16, %s982_s19 }
  0x34   : > { %s185_s7 = sshll.u32 %s179_s6, 4  ;;  %p63_p7 = scmp.eq.s32.totalorder %s62_s8, 0  ;;  %s186_s7 = int_to_ptr.vmem [resolvable:$true] %s185_s7 }
  0x35   : > { %s176_s9 = scalar_lea.sflag [#allocation6], %s175_s11  ;;  %p967_p8 = scmp.ne.s32.totalorder %s965_s28, 0 }
  0x36   : > { %s872_s4 = scalar_select %p63_p7, %s714_s14, %s65_s20  }
  0x37   : > { %p612_p9 = pneg %p967_p8  ;;  %s623_s10 = scalar_lea.vmem %s186_s7, 256 }
  0x38   : > { %p624_p12 = scmp.ne.s32.totalorder %s186_s7, %s623_s10  ;;  %s730_s21 = smov [#allocation5]  }
  0x39   : > { %s628_s29 = sshll.u32 %s730_s21, 4  ;;  %s629_s29 = int_to_ptr.vmem [resolvable:$false] %s628_s29 }
  0x3a   : > { %p626_p1 = pnand %p624_p12, %p612_p9  ;;  %s630_s27 = scalar_lea.vmem %s629_s29, 512 }
  0x3b   : > { %p631_p4 = scmp.lt.s32.totalorder %s186_s7, %s629_s29  ;;  %p632_p10 = scmp.lt.s32.totalorder %s630_s27, %s623_s10 }
  0x3c   : > { %p627_p2 = pneg %p626_p1 }
  0x3d   : > { %p633_p11 = por %p632_p10, %p631_p4 }
  0x3f   : > { %p634_p13 = pnand %p633_p11, %p627_p2 }
  0x41   : > { %637 = shalt.err (!%p634_p13)
}
  0x42   : > { %s731_s26 = smov 192   ;;  %s732_s20 = smov 64  }
  0x43   : > { %s733_s11 = smov 4   ;;  %p968_p0 = scmp.ne.s32.totalorder %s964_s25, 0 }
  0x44   : > { %486 = dma.hbm_to_vmem [thread:$0]  (!%p967_p8), %s865_s5, 256, %s186_s7, %s176_s9, %s731_s26, %s732_s20, %s733_s11  }
  0x45   : > { %197 = sbr.rel (%p968_p0) target bundleno = 330 (0x14a), region = 32  ;;  %p969_p6 = scmp.eq.s32.totalorder (!%p968_p0), %s788_s18, 0 }
  0x4a   : > { %689 = dma.done.wait (%p969_p6), [#allocation3], 128   ;;  %p970_p5 = pmov %p969_p6 }
  0x4b   : > { %s203_s30 = sand.u32 1, %s788_s18   ;;  %s887_s6 = sand.u32 1, %s710_s13  }
  0x4c   : > { %691 = vsyncadd (%p970_p5), [#allocation3], 4294967168  ;;  %s441_s8 = sshll.u32 %s887_s6, 4  ;;  %s204_s10 = scalar_lea.sflag [#allocation6], %s203_s30 }
  0x4d   : > { %s207_s28 = scalar_lea.vmem [#allocation5], %s441_s8  ;;  %p971_p3 = scmp.ne.s32.totalorder %s961_s22, 0 }
  0x4f   : > { %693 = dma.done.wait (%p971_p3), %s204_s10, 256  }
  0x50   : > { %695 = vsyncadd (%p971_p3), %s204_s10, 4294967040  ;;  %p972_p7 = pmov %p970_p5 }
  0x51   : > { %p973_p8 = pmov %p970_p5 }
  0x52   : > { %697 = dma.done.wait (%p972_p7), [#allocation6], 64  }
  0x53   : > { %699 = vsyncadd (%p973_p8), [#allocation6], 4294967232  ;;  %v734_v0 = vmov 0.0   ;;  %vm735_vm0 = vmmov 0   ;;  %v552_v1 = vld [vmem:[%s207_s28 + $0x8] sm:$0xff]   ;;  %v553_v2 = vld [vmem:[%s207_s28] sm:$0xff]  }
  0x54   : > { %456 = vmatprep.subr.bf16.mxu0 %v734_v0  ;;  %460 = vmatprep.mubr.msk.bf16.mxu0 %vm735_vm0, %v734_v0  ;;  %v235_v3 = vld [vmem:[#allocation2] sm:$0xff]  ;;  %vm266_vm1 = vcmask 261120   ;;  %s443_s18 = sshll.u32 %s887_s6, 3  ;;  %s248_s22 = scalar_lea.vmem [#allocation7], %s718_s15 }
  0x55   : > { %457 = vmatpush3.bf16.msra.mxu0 %v552_v1  ;;  %v444_v4 = vmul.f32 -1.442695, %v235_v3  ;;  %v445_v10 = vld [vmem:[%s248_s22] ss:$0 sm:$0xff]  ;;  %s450_s25 = sshll.u32 %s718_s15, 7  ;;  %s233_s5 = scalar_lea.vmem [#allocation8], %s443_s18 }
  0x56   : > { %458 = vmatprep.subr.bf16.mxu0 %v734_v0  ;;  %s327_s7 = sshll.u32 %s233_s5, 4  ;;  %s904_s29 = scalar_lea.hbm %s954_s3, %s450_s25  ;;  %s906_s7 = int_to_ptr.vmem [resolvable:$true] %s327_s7 }
  0x57   : > { %554 = vpow2.f32 %v444_v4  ;;  %s312_s27 = scalar_lea.sflag [#allocation4], %s887_s6  ;;  %s638_s26 = scalar_lea.vmem %s906_s7, 128 }
  0x58   : > { %p639_p9 = scmp.ne.s32.totalorder %s906_s7, %s638_s26  ;;  %p974_p12 = scmp.ne.s32.totalorder %s962_s23, 0 }
  0x59   : > { %459 = vmatpush3.bf16.msra.mxu0 %v553_v2  ;;  %s736_s15 = smov [#allocation8]  }
  0x5a   : > { %p640_p1 = pnand %p639_p9, %p974_p12  ;;  %s642_s20 = sshll.u32 %s736_s15, 4  ;;  %s643_s20 = int_to_ptr.vmem [resolvable:$false] %s642_s20 }
  0x5b   : > { %s644_s11 = scalar_lea.vmem %s643_s20, 256  ;;  %p645_p4 = scmp.lt.s32.totalorder %s906_s7, %s643_s20 }
  0x5c   : > { %p641_p2 = pneg %p640_p1  ;;  %p646_p10 = scmp.lt.s32.totalorder %s644_s11, %s638_s26 }
  0x5e   : > { %p647_p11 = por %p646_p10, %p645_p4 }
  0x60   : > { %p648_p13 = pnand %p647_p11, %p641_p2 }
  0x64   : > { %v555_v5 = vpop.eup %554 }
  0x65   : > { %v239_v6 = vadd.f32 1.0, %v555_v5 }
  0x67   : > { %556 = vrcp.f32 %v239_v6 }
  0x74   : > { %v557_v7 = vpop.eup %556 }
  0x75   : > { %v242_v8 = vmul.f32 %v557_v7, %v235_v3 }
  0x77   : > { %v243_v9 = vpack.c.bf16 %v242_v8, %v242_v8 }
  0x79   : > { %461 = vmatmul.mubr.msk.bf16.vlgmr.msra.gmra.mxu0 %vm266_vm1, %v243_v9 }
 0x139   : > { %v304_v11 = vpop.f32.mrf.mxu0 }
 0x13a   : > { %v305_v12 = vadd.f32 %v445_v10, %v304_v11 }
 0x13b   : > { %v462_v13 = vpop.f32.mrf.mxu0 }
 0x13c   : > { %310 = vst [vmem:[%s233_s5] sm:$0xff] %v305_v12 }
 0x13d   : > { %v307_v14 = vpop.f32.mrf.mxu0 }
 0x13e   : > { %651 = shalt.err (!%p648_p13)
}
 0x13f   : > { %s652_s30 = scalar_lea.hbm %s904_s29, 128  ;;  %s656_s10 = scalar_lea.hbm %s954_s3, 384 }
 0x140   : > { %p653_p0 = scmp.ne.s32.totalorder %s904_s29, %s652_s30  ;;  %p657_p3 = scmp.lt.s32.totalorder %s904_s29, %s954_s3 }
 0x141   : > { %p658_p7 = scmp.lt.s32.totalorder %s656_s10, %s652_s30 }
 0x142   : > { %p654_p6 = pnand %p653_p0, %p974_p12 }
 0x143   : > { %p659_p8 = por %p658_p7, %p657_p3 }
 0x144   : > { %p655_p5 = pneg %p654_p6 }
 0x146   : > { %p660_p9 = pnand %p659_p8, %p655_p5 }
 0x148   : > { %663 = shalt.err (!%p660_p9)
}
 0x149   : > { %474 = dma.vmem_to_hbm [thread:$0]  (%p974_p12), %s906_s7, 128, %s904_s29, %s312_s27   ;;  %v463_v15 = vpop.f32.mrf.mxu0 }
 0x14a PF: > { %p496_p1 = scmp.ge.s32.totalorder %s726_s17, 2  ;;  %s339_s22 = sand.u32 1, %s706_s12  }
 0x14b   : > { %p975_p2 = scmp.ne.s32.totalorder %s963_s24, 0  ;;  %s340_s25 = scalar_lea.sflag [#allocation4], %s339_s22 }
 0x14d   : > { %p488_p4 = pnand %p496_p1, %p975_p2 }
 0x14f   : > { %p489_p10 = pneg %p488_p4 }
 0x151   : > { %701 = dma.done.wait (%p489_p10), %s340_s25, 128  }
 0x152   : > { %703 = vsyncadd (%p489_p10), %s340_s25, 4294967168  ;;  %s20_s17 = sadd.s32 1, %s726_s17   ;;  %s976_s12 = smov %s710_s13 }
 0x153   : > { %p17_p11 = scmp.ge.s32.totalorder %s20_s17, 5   ;;  %s977_s13 = smov %s714_s14 }
 0x154   : > { %s978_s14 = smov %s872_s4  ;;  %s979_s15 = smov %s722_s16 }
 0x155   : > { %s980_s16 = smov %s982_s19  ;;  %19 = sbr.rel (!%p17_p11) target bundleno = 7 (0x7), region = 88 }
 0x15a   :  { %345 = vsyncpa [#allocation3], 1 }
 0x15b   :  { %347 = vsyncpa [#allocation3 + $0x1], 1 }
 0x15c   :  { %348 = vsyncpa [#allocation6], 1 }
 0x15d   :  { %350 = vsyncpa [#allocation6 + $0x1], 1 }
 0x15e   :  { %351 = vsyncpa [#allocation4], 1 }
 0x15f   :  { %353 = vsyncpa [#allocation4 + $0x1], 1 }

</bundles_post_ra>
